<compile_context>
chip_gen: v6e
topology: v6e:2x2x1
jax: 0.10.0
libtpu: 0.0.40
codegen_flags: <defaults>
</compile_context>

<pallas_src>
import functools

import jax
import jax.numpy as jnp
from jax import lax
from jax.experimental import pallas as pl
from jax.experimental.pallas import tpu as pltpu

SELU_ALPHA = 1.6732632423543772
SELU_SCALE = 1.0507009873554805
BN_EPS = 1e-3


def _cdiv(a, b):
    return -(-a // b)


def _round_up(a, b):
    return _cdiv(a, b) * b


def _block_cap_bytes():
    """Per-tile byte budget, generation aware (v7x has half of v6e's VMEM).

    Pass 2 holds ~4 resident tile copies (in + out, double-buffered); pass 1
    holds 2 input copies + 2 f32 scratch tiles.  A 1-2 MiB tile therefore
    stays far below the scoped-VMEM defaults (16 MiB v5e, 32 MiB v6e/v7x)."""
    vmem = 64 * 1024 * 1024
    try:
        vmem = int(pltpu.get_tpu_info().vmem_capacity_bytes)
    except Exception:
        pass
    return int(min(2 * 1024 * 1024, max(1 * 1024 * 1024, vmem // 64)))


def _spatial_tiling(hw, cap_bytes):
    """Split the flattened spatial axis into T tiles of TP 128-lane rows.

    Returns (tp, p, t) with p = t * tp >= ceil(hw/128).  tp is a multiple of 8
    (or the tiny full extent) so every block is (8,128)-legal and all loads /
    stores are unmasked, full-vreg accesses."""
    p0 = _cdiv(hw, 128)
    if p0 <= 8:
        return p0, p0, 1
    p = _round_up(p0, 8)
    cap_rows = max(8, (cap_bytes // (128 * 4) // 8) * 8)
    if p <= cap_rows:
        return p, p, 1
    t = _cdiv(p, cap_rows)
    tp = _round_up(_cdiv(p, t), 8)
    return tp, t * tp, t


def _reduce_kernel(x_ref, sum_ref, sumsq_ref, acc_s, acc_q, *, tp, kr):
    """Per-(n, c) partial sum / sum-of-squares over the spatial tiles."""
    ti = pl.program_id(2)

    @pl.when(ti == 0)
    def _():
        acc_s[...] = jnp.zeros_like(acc_s)
        acc_q[...] = jnp.zeros_like(acc_q)

    x = x_ref[0, 0].astype(jnp.float32)            # [tp, 128] — pure VPU adds
    acc_s[...] += x
    acc_q[...] += x * x

    @pl.when(ti == pl.num_programs(2) - 1)
    def _():
        # Fold the (tp, 128) accumulator down to (1, 128) once per (n, c):
        # sublane-aligned adds, then a single sublane reduction.
        s = acc_s[0:kr, :]
        q = acc_q[0:kr, :]
        for i in range(1, tp // kr):
            s = s + acc_s[i * kr:(i + 1) * kr, :]
            q = q + acc_q[i * kr:(i + 1) * kr, :]
        sum_ref[0, 0] = jnp.sum(s, axis=0, keepdims=True)      # [1, 128]
        sumsq_ref[0, 0] = jnp.sum(q, axis=0, keepdims=True)


def _apply_selu_kernel(x_ref, scale_ref, shift_ref, o_ref):
    """y = x * scale[c] + shift[c]; SELU(y).  scale/shift are SMEM scalars."""
    ci = pl.program_id(1)
    s = scale_ref[ci]
    b = shift_ref[ci]
    y = x_ref[0, 0].astype(jnp.float32) * s + b                # folded BN affine
    o_ref[0, 0] = (SELU_SCALE *
                   jnp.where(y > 0, y, SELU_ALPHA * jnp.expm1(y))
                   ).astype(o_ref.dtype)


def bnprelu(x_nchw, gamma, beta):
    """Training-mode BatchNorm2d(eps=1e-3, affine=(gamma, beta)) + SELU.

    x_nchw: [N, C, H, W] (any float dtype; streamed as-is), gamma/beta: [C]."""
    n, c, h, w = x_nchw.shape
    hw = h * w
    tp, p, t = _spatial_tiling(hw, _block_cap_bytes())
    kr = min(tp, 8)
    hw_pad = p * 128

    x3 = x_nchw.reshape(n, c, hw)
    if hw_pad != hw:
        # Zero padding does not change sum / sum-of-squares; the true element
        # count (n*hw) is used below and padded outputs are sliced off.
        x3 = jnp.pad(x3, ((0, 0), (0, 0), (0, hw_pad - hw)))
    x4 = x3.reshape(n, c, p, 128)

    grid = (n, c, t)
    x_spec = pl.BlockSpec((1, 1, tp, 128), lambda ni, ci, ti: (ni, ci, ti, 0))
    part_spec = pl.BlockSpec((1, 1, 1, 128), lambda ni, ci, ti: (ni, ci, 0, 0))

    # ---- pass 1: per-(n, c) partial sums (megacore-parallel over N, C) ----
    psum, psq = pl.pallas_call(
        functools.partial(_reduce_kernel, tp=tp, kr=kr),
        out_shape=(jax.ShapeDtypeStruct((n, c, 1, 128), jnp.float32),
                   jax.ShapeDtypeStruct((n, c, 1, 128), jnp.float32)),
        grid_spec=pltpu.PrefetchScalarGridSpec(
            num_scalar_prefetch=0, grid=grid,
            in_specs=[x_spec],
            out_specs=[part_spec, part_spec],
            scratch_shapes=[pltpu.VMEM((tp, 128), jnp.float32),
                            pltpu.VMEM((tp, 128), jnp.float32)]),
        compiler_params=pltpu.CompilerParams(
            dimension_semantics=("parallel", "parallel", "arbitrary")),
    )(x4)

    # ---- tiny JAX glue: fold batch stats + gamma/beta into scale/shift ----
    m = float(n * hw)
    tot = jnp.sum(psum, axis=(0, 2, 3))                       # [C]
    totq = jnp.sum(psq, axis=(0, 2, 3))                       # [C]
    mean = tot / m
    # TODO(synk): E[x^2]-mean^2 can lose precision for very large-mean
    # activations; a per-tile Chan/Welford combine would fix that.
    var = jnp.maximum(totq / m - mean * mean, 0.0)
    scale = gamma.astype(jnp.float32) * lax.rsqrt(var + BN_EPS)
    shift = beta.astype(jnp.float32) - mean * scale

    # ---- pass 2: y = x*scale[c] + shift[c], then SELU ----
    chan_spec = pl.BlockSpec(memory_space=pltpu.MemorySpace.SMEM)
    out4 = pl.pallas_call(
        _apply_selu_kernel,
        out_shape=jax.ShapeDtypeStruct(x4.shape, x_nchw.dtype),
        grid_spec=pltpu.PrefetchScalarGridSpec(
            num_scalar_prefetch=0, grid=grid,
            in_specs=[x_spec, chan_spec, chan_spec],
            out_specs=x_spec),
        compiler_params=pltpu.CompilerParams(
            dimension_semantics=("parallel", "parallel", "parallel")),
    )(x4, scale, shift)

    out3 = out4.reshape(n, c, hw_pad)
    if hw_pad != hw:
        out3 = out3[:, :, :hw]
    return out3.reshape(n, c, h, w)


def _reference(x, gamma, beta):
    """Pure-JAX mirror of the PyTorch forward (training-mode BN, eps=1e-3)."""
    mean = jnp.mean(x, axis=(0, 2, 3), keepdims=True)
    var = jnp.mean(jnp.square(x - mean), axis=(0, 2, 3), keepdims=True)
    y = (x - mean) * lax.rsqrt(var + BN_EPS)
    y = y * gamma.reshape(1, -1, 1, 1) + beta.reshape(1, -1, 1, 1)
    return jax.nn.selu(y)


if __name__ == "__main__":
    key = jax.random.PRNGKey(0)
    k_x, k_g, k_b = jax.random.split(key, 3)

    N, C, H, W = 2, 4, 16, 16
    x = jax.random.normal(k_x, (N, C, H, W), dtype=jnp.float32)
    gamma = 1.0 + 0.1 * jax.random.normal(k_g, (C,), dtype=jnp.float32)
    beta = 0.1 * jax.random.normal(k_b, (C,), dtype=jnp.float32)

    out = bnprelu(x, gamma, beta)
    jax.block_until_ready(out)

    ref = _reference(x, gamma, beta)
    assert out.shape == (N, C, H, W), out.shape
    err = float(jnp.abs(out - ref).max())
    assert jnp.allclose(out, ref, atol=1e-4, rtol=1e-4), err

    print("KERNEL_OK")
</pallas_src>

<mosaic_0001>
module attributes {stable_mosaic.version = 11 : i64} {
  func.func @_reduce_kernel(%arg0: i32, %arg1: i32, %arg2: i32, %arg3: memref<1x1x2x128xf32, #tpu.memory_space<vmem>>, %arg4: memref<1x1x1x128xf32, #tpu.memory_space<vmem>>, %arg5: memref<1x1x1x128xf32, #tpu.memory_space<vmem>>, %arg6: memref<2x128xf32, #tpu.memory_space<vmem>>, %arg7: memref<2x128xf32, #tpu.memory_space<vmem>>) attributes {dimension_semantics = [#tpu.dimension_semantics<parallel>, #tpu.dimension_semantics<parallel>, #tpu.dimension_semantics<arbitrary>], iteration_bounds = array<i64: 2, 4, 1>, scalar_prefetch = 0 : i64, scratch_operands = 2 : i64, tpu.core_type = #tpu.core_type<tc>, window_params = [{transform_indices = @transform_0, window_bounds = array<i64: 1, 1, 2, 128>}, {transform_indices = @transform_1, window_bounds = array<i64: 1, 1, 1, 128>}, {transform_indices = @transform_2, window_bounds = array<i64: 1, 1, 1, 128>}]} {
    %c0_i32 = arith.constant 0 : i32
    %0 = arith.cmpi eq, %arg2, %c0_i32 : i32
    %1 = arith.extui %0 : i1 to i32
    %c0_i32_0 = arith.constant 0 : i32
    %2 = arith.cmpi ne, %1, %c0_i32_0 : i32
    scf.if %2 {
      %cst = arith.constant 0.000000e+00 : f32
      %15 = vector.broadcast %cst : f32 to vector<2x128xf32>
      %c0_14 = arith.constant 0 : index
      %c0_15 = arith.constant 0 : index
      %16 = vector.load %arg6[%c0_14, %c0_15] : memref<2x128xf32, #tpu.memory_space<vmem>>, vector<2x128xf32>
      tpu.vector_store %arg6[%c0_14, %c0_15], %15 {strides = array<i32>} : memref<2x128xf32, #tpu.memory_space<vmem>>, vector<2x128xf32>,
      %cst_16 = arith.constant 0.000000e+00 : f32
      %17 = vector.broadcast %cst_16 : f32 to vector<2x128xf32>
      %c0_17 = arith.constant 0 : index
      %c0_18 = arith.constant 0 : index
      %18 = vector.load %arg7[%c0_17, %c0_18] : memref<2x128xf32, #tpu.memory_space<vmem>>, vector<2x128xf32>
      tpu.vector_store %arg7[%c0_17, %c0_18], %17 {strides = array<i32>} : memref<2x128xf32, #tpu.memory_space<vmem>>, vector<2x128xf32>,
    } else {
    }
    %c0 = arith.constant 0 : index
    %c0_1 = arith.constant 0 : index
    %c0_2 = arith.constant 0 : index
    %c0_3 = arith.constant 0 : index
    %3 = vector.load %arg3[%c0, %c0_1, %c0_2, %c0_3] : memref<1x1x2x128xf32, #tpu.memory_space<vmem>>, vector<1x1x2x128xf32>
    %4 = vector.shape_cast %3 : vector<1x1x2x128xf32> to vector<2x128xf32>
    %c0_4 = arith.constant 0 : index
    %c0_5 = arith.constant 0 : index
    %5 = vector.load %arg6[%c0_4, %c0_5] : memref<2x128xf32, #tpu.memory_space<vmem>>, vector<2x128xf32>
    %6 = arith.addf %5, %4 : vector<2x128xf32>
    %c0_6 = arith.constant 0 : index
    %c0_7 = arith.constant 0 : index
    %7 = vector.load %arg6[%c0_6, %c0_7] : memref<2x128xf32, #tpu.memory_space<vmem>>, vector<2x128xf32>
    tpu.vector_store %arg6[%c0_6, %c0_7], %6 {strides = array<i32>} : memref<2x128xf32, #tpu.memory_space<vmem>>, vector<2x128xf32>,
    %c0_8 = arith.constant 0 : index
    %c0_9 = arith.constant 0 : index
    %8 = vector.load %arg7[%c0_8, %c0_9] : memref<2x128xf32, #tpu.memory_space<vmem>>, vector<2x128xf32>
    %9 = arith.mulf %4, %4 : vector<2x128xf32>
    %10 = arith.addf %8, %9 : vector<2x128xf32>
    %c0_10 = arith.constant 0 : index
    %c0_11 = arith.constant 0 : index
    %11 = vector.load %arg7[%c0_10, %c0_11] : memref<2x128xf32, #tpu.memory_space<vmem>>, vector<2x128xf32>
    tpu.vector_store %arg7[%c0_10, %c0_11], %10 {strides = array<i32>} : memref<2x128xf32, #tpu.memory_space<vmem>>, vector<2x128xf32>,
    %c0_i32_12 = arith.constant 0 : i32
    %12 = arith.cmpi eq, %arg2, %c0_i32_12 : i32
    %13 = arith.extui %12 : i1 to i32
    %c0_i32_13 = arith.constant 0 : i32
    %14 = arith.cmpi ne, %13, %c0_i32_13 : i32
    scf.if %14 {
      %c0_14 = arith.constant 0 : index
      %c0_15 = arith.constant 0 : index
      %15 = vector.load %arg6[%c0_14, %c0_15] : memref<2x128xf32, #tpu.memory_space<vmem>>, vector<2x128xf32>
      %c0_16 = arith.constant 0 : index
      %c0_17 = arith.constant 0 : index
      %16 = vector.load %arg7[%c0_16, %c0_17] : memref<2x128xf32, #tpu.memory_space<vmem>>, vector<2x128xf32>
      %cst = arith.constant dense<0.000000e+00> : vector<128xf32>
      %17 = vector.multi_reduction <add>, %15, %cst [0] : vector<2x128xf32> to vector<128xf32>
      %18 = vector.shape_cast %17 : vector<128xf32> to vector<1x128xf32>
      %c0_18 = arith.constant 0 : index
      %c0_19 = arith.constant 0 : index
      %c0_20 = arith.constant 0 : index
      %c0_21 = arith.constant 0 : index
      %19 = vector.load %arg4[%c0_18, %c0_19, %c0_20, %c0_21] : memref<1x1x1x128xf32, #tpu.memory_space<vmem>>, vector<1x1x1x128xf32>
      %20 = vector.shape_cast %19 : vector<1x1x1x128xf32> to vector<1x128xf32>
      %21 = vector.shape_cast %18 : vector<1x128xf32> to vector<1x1x1x128xf32>
      tpu.vector_store %arg4[%c0_18, %c0_19, %c0_20, %c0_21], %21 {strides = array<i32>} : memref<1x1x1x128xf32, #tpu.memory_space<vmem>>, vector<1x1x1x128xf32>,
      %cst_22 = arith.constant dense<0.000000e+00> : vector<128xf32>
      %22 = vector.multi_reduction <add>, %16, %cst_22 [0] : vector<2x128xf32> to vector<128xf32>
      %23 = vector.shape_cast %22 : vector<128xf32> to vector<1x128xf32>
      %c0_23 = arith.constant 0 : index
      %c0_24 = arith.constant 0 : index
      %c0_25 = arith.constant 0 : index
      %c0_26 = arith.constant 0 : index
      %24 = vector.load %arg5[%c0_23, %c0_24, %c0_25, %c0_26] : memref<1x1x1x128xf32, #tpu.memory_space<vmem>>, vector<1x1x1x128xf32>
      %25 = vector.shape_cast %24 : vector<1x1x1x128xf32> to vector<1x128xf32>
      %26 = vector.shape_cast %23 : vector<1x128xf32> to vector<1x1x1x128xf32>
      tpu.vector_store %arg5[%c0_23, %c0_24, %c0_25, %c0_26], %26 {strides = array<i32>} : memref<1x1x1x128xf32, #tpu.memory_space<vmem>>, vector<1x1x1x128xf32>,
    } else {
    }
    return
  }
  func.func @transform_0(%arg0: i32, %arg1: i32, %arg2: i32) -> (i32, i32, i32, i32) {
    %c0_i32 = arith.constant 0 : i32
    %c0_i32_0 = arith.constant 0 : i32
    return %arg0, %arg1, %arg2, %c0_i32 : i32, i32, i32, i32
  }
  func.func @transform_1(%arg0: i32, %arg1: i32, %arg2: i32) -> (i32, i32, i32, i32) {
    %c0_i32 = arith.constant 0 : i32
    %c0_i32_0 = arith.constant 0 : i32
    %c0_i32_1 = arith.constant 0 : i32
    return %arg0, %arg1, %c0_i32, %c0_i32_0 : i32, i32, i32, i32
  }
  func.func @transform_2(%arg0: i32, %arg1: i32, %arg2: i32) -> (i32, i32, i32, i32) {
    %c0_i32 = arith.constant 0 : i32
    %c0_i32_0 = arith.constant 0 : i32
    %c0_i32_1 = arith.constant 0 : i32
    return %arg0, %arg1, %c0_i32, %c0_i32_0 : i32, i32, i32, i32
  }
}

</mosaic_0001>

<bundles_post_ra>
// kernel: tpu_custom_call.1
= control target key start
LH: loop header
LB: loop body
LE: loop exit
PB: predicated region body
PF: predicated region fallthrough
CT: control target
= control target key end

     0   :  { %8 = vsyncpa [#allocation5], 0  ;;  %s855_s0 = inlined_call_operand.hbm [shape: f32[2,4,2,128], index: 0, kind: input, shape index: {}]   ;;  %s856_s1 = inlined_call_operand.hbm [shape: f32[2,4,1,128], index: 1, kind: output, shape index: {0}]   ;;  %s857_s2 = inlined_call_operand.hbm [shape: f32[2,4,1,128], index: 2, kind: output, shape index: {1}]  }
   0x1   :  { %10 = vsyncpa [#allocation5 + $0x1], 0 }
   0x2   :  { %11 = vsyncpa [#allocation6], 0 }
   0x3   :  { %13 = vsyncpa [#allocation6 + $0x1], 0 }
   0x4   :  { %14 = vsyncpa [#allocation9], 0 }
   0x5   :  { %16 = vsyncpa [#allocation9 + $0x1], 0  ;;  %s657_s9 = smov 0   ;;  %s659_s10 = smov 0  }
   0x6   :  { %s661_s11 = smov 0   ;;  %s663_s12 = smov 0  }
   0x7   :  { %s665_s13 = smov 0   ;;  %s667_s14 = smov 0  }
   0x8   :  { %s669_s15 = smov 0   ;;  %s671_s16 = smov 0  }
   0x9 LB: > { %s383_s17 = sadd.s32 4294967295, %s636_s16   ;;  %s384_s18 = sadd.s32 4294967294, %s636_s16   ;;  %s636_s16 = sphi %s671_s16, %s22_s16   ;;  %s632_s15 = sphi %s669_s15, %s870_s15   ;;  %s628_s14 = sphi %s667_s14, %s869_s14   ;;  %s624_s13 = sphi %s665_s13, %s868_s13   ;;  %s620_s12 = sphi %s663_s12, %s867_s12   ;;  %s616_s11 = sphi %s661_s11, %s866_s11   ;;  %s612_s10 = sphi %s659_s10, %s865_s10   ;;  %s608_s9 = sphi %s657_s9, %s864_s9  }
   0xa   : > { %s37_s19 = sadd.s32 1, %s628_s14  ;;  %s41_s20 = sadd.s32 1, %s632_s15 }
   0xb   : > { %p39_p0 = scmp.ge.s32.totalorder %s37_s19, 4  ;;  %s52_s21 = sadd.s32 1, %s616_s11 }
   0xc   : > { %p59_p1 = scmp.ne.s32.totalorder %s616_s11, %s612_s10  ;;  %p60_p2 = scmp.eq.s32.totalorder %s636_s16, 0 }
   0xd   : > { %s872_s19 = smov (%p39_p0, %s37_s19), 0  ;;  %s874_s20 = smov (!%p39_p0, %s41_s20), %s632_s15 }
   0xe   : > { %s46_s22 = ssub.s32 %s628_s14, %s872_s19  ;;  %p710_p3 = por %p60_p2, %p59_p1 }
   0xf   : > { %p43_p4 = scmp.ge.s32.totalorder %s874_s20, 2  ;;  %p65_p5 = scmp.ne.s32.totalorder %s612_s10, %s608_s9 }
  0x10   : > { %p66_p6 = scmp.eq.s32.totalorder %s383_s17, 0  ;;  %p91_p7 = scmp.eq.s32.totalorder %s383_s17, 7 }
  0x11   : > { %s876_s20 = smov (%p43_p4, %s874_s20), 0  ;;  %p97_p10 = scmp.eq.s32.totalorder %s384_s18, 7 }
  0x12   : > { %p718_p8 = por %p66_p6, %p65_p5  ;;  %p722_p9 = por %p91_p7, %p59_p1 }
  0x13   : > { %s45_s26 = ssub.s32 %s632_s15, %s876_s20  ;;  %p728_p12 = por %p97_p10, %p65_p5 }
  0x14   : > { %s47_s27 = sor.u32 %s46_s22, %s45_s26  ;;  %p415_p13 = scmp.lt.s32.totalorder %s636_s16, 8 }
  0x15   : > { %p50_p11 = scmp.eq.s32.totalorder %s47_s27, 0  ;;  %s145_s29 = sand.u32 1, %s616_s11  }
  0x16   : > { %s861_s28 = scalar_select %p728_p12, 1, 0 }
  0x17   : > { %s735_s30 = scalar_select %p50_p11, %s616_s11, %s52_s21  }
  0x18   : > { %s387_s3 = sshll.u32 %s145_s29, 1  ;;  %s388_s4 = sshll.u32 %s632_s15, 2 }
  0x19   : > { %s155_s5 = sadd.s32 %s628_s14, %s388_s4  ;;  %s149_s6 = scalar_lea.vmem [#allocation4], %s387_s3 }
  0x1a   : > { %s159_s7 = sshll.u32 %s149_s6, 4  ;;  %s389_s8 = sshll.u32 %s155_s5, 5  ;;  %s160_s7 = int_to_ptr.vmem [resolvable:$true] %s159_s7 }
  0x1b   : > { %s157_s22 = scalar_lea.hbm %s855_s0, %s389_s8  ;;  %p744_p0 = pnand %p415_p13, %p710_p3 }
  0x1c   : > { %p390_p1 = scmp.ge.s32.totalorder %s636_s16, 1  ;;  %p164_p2 = scmp.lt.s32.totalorder %s636_s16, 9 }
  0x1d   : > { %s146_s21 = scalar_lea.sflag [#allocation5], %s145_s29  ;;  %p484_p4 = pneg %p744_p0 }
  0x1e   : > { %s495_s27 = scalar_lea.vmem %s160_s7, 32  ;;  %s638_s3 = smov [#allocation4]  }
  0x1f   : > { %p496_p5 = scmp.ne.s32.totalorder %s160_s7, %s495_s27  ;;  %s500_s4 = sshll.u32 %s638_s3, 4  ;;  %s501_s4 = int_to_ptr.vmem [resolvable:$false] %s500_s4 }
  0x20   : > { %s502_s5 = scalar_lea.vmem %s501_s4, 64  ;;  %p503_p10 = scmp.lt.s32.totalorder %s160_s7, %s501_s4 }
  0x21   : > { %p498_p6 = pnand %p496_p5, %p484_p4  ;;  %p504_p11 = scmp.lt.s32.totalorder %s502_s5, %s495_s27 }
  0x23   : > { %p499_p7 = pneg %p498_p6  ;;  %p505_p3 = por %p504_p11, %p503_p10 }
  0x25   : > { %p506_p13 = pnand %p505_p3, %p499_p7 }
  0x27   : > { %509 = shalt.err (!%p506_p13)
}
  0x28   : > { %407 = dma.hbm_to_vmem [thread:$0]  (!%p744_p0), %s157_s22, 32, %s160_s7, %s146_s21  }
  0x29   : > { %p165_p12 = pnand %p390_p1, %p164_p2 }
  0x2a   : > { %s759_s23 = sand.u32 (!%p165_p12), 1, %s612_s10  }
  0x2b   : > { %168 = sbr.rel (%p165_p12) target bundleno = 116 (0x74), region = 24  ;;  %s391_s29 = sshll.u32 (!%p165_p12), %s759_s23, 1 }
  0x2c   : > { %s171_s6 = scalar_lea.sflag (!%p165_p12), [#allocation5], %s759_s23  ;;  %s174_s8 = scalar_lea.vmem (!%p165_p12), [#allocation4], %s391_s29 }
  0x30   : > { %595 = dma.done.wait (%p718_p8), %s171_s6, 32  }
  0x31   : > { %597 = vsyncadd (%p718_p8), %s171_s6, 4294967264  ;;  %v639_v0 = vmov 0.0   ;;  %v204_v1 = vld [vmem:[%s174_s8] sm:$0x3]  ;;  %vm217_vm0 = vcmask 1041408   ;;  %s392_s24 = sshll.u32 %s624_s13, 2 }
  0x32   : > { %202 = vst [vmem:[#allocation2] sm:$0x3] %v639_v0  ;;  %203 = vst [vmem:[#allocation3] sm:$0x3] %v639_v0  ;;  %v209_v4 = vmul.f32 %v204_v1, %v204_v1  ;;  %s249_s7 = sadd.s32 %s620_s12, %s392_s24  ;;  %s191_s17 = scalar_lea.vmem [#allocation7], %s759_s23 }
  0x33   : > { %s253_s18 = sshll.u32 %s191_s17, 4  ;;  %s197_s22 = scalar_lea.vmem [#allocation8], %s759_s23  ;;  %s771_s18 = int_to_ptr.vmem [resolvable:$true] %s253_s18 }
  0x34   : > { %s268_s26 = sshll.u32 %s197_s22, 4  ;;  %s393_s21 = sshll.u32 %s249_s7, 4  ;;  %s773_s26 = int_to_ptr.vmem [resolvable:$true] %s268_s26 }
  0x35   : > { %s778_s27 = scalar_lea.hbm %s856_s1, %s393_s21  ;;  %s783_s5 = scalar_lea.hbm %s857_s2, %s393_s21 }
  0x36   : > { %s235_s29 = scalar_lea.sflag [#allocation6], %s759_s23  ;;  %s510_s6 = scalar_lea.vmem %s771_s18, 16 }
  0x37   : > { %p511_p8 = scmp.ne.s32.totalorder %s771_s18, %s510_s6  ;;  %s640_s8 = smov [#allocation7]  }
  0x38   : > { %s514_s24 = sshll.u32 %s640_s8, 4  ;;  %s515_s24 = int_to_ptr.vmem [resolvable:$false] %s514_s24 }
  0x39   : > { %v205_v2 = vld [vmem:[#allocation2] sm:$0x3]  ;;  %v208_v3 = vld [vmem:[#allocation3] sm:$0x3]  ;;  %p512_p12 = pnand %p511_p8, %p722_p9  ;;  %s516_s7 = scalar_lea.vmem %s515_s24, 32 }
  0x3a   : > { %v206_v5 = vadd.f32 %v205_v2, %v204_v1  ;;  %v210_v6 = vadd.f32 %v209_v4, %v208_v3  ;;  %p517_p1 = scmp.lt.s32.totalorder %s771_s18, %s515_s24  ;;  %p518_p2 = scmp.lt.s32.totalorder %s516_s7, %s510_s6 }
  0x3b   : > { %p513_p0 = pneg %p512_p12 }
  0x3c   : > { %207 = vst [vmem:[#allocation2] sm:$0x3] %v206_v5  ;;  %211 = vst [vmem:[#allocation3] sm:$0x3] %v210_v6  ;;  %p519_p4 = por %p518_p2, %p517_p1 }
  0x3e   : > { %p520_p5 = pnand %p519_p4, %p513_p0 }
  0x43   : > { %v215_v7 = vld [vmem:[#allocation2] sm:$0x3]  ;;  %v216_v9 = vld [vmem:[#allocation3] sm:$0x3] }
  0x44   : > { %v218_v8 = vsel %vm217_vm0, %v215_v7, 0.0  ;;  %v226_v11 = vsel %vm217_vm0, %v216_v9, 0.0 }
  0x45   : > { %v219_v10 = vrot.slane %v218_v8, 4  ;;  %v227_v12 = vrot.slane %v226_v11, 4 }
  0x47   : > { %v220_v13 = vadd.f32 %v219_v10, %v218_v8  ;;  %v228_v14 = vadd.f32 %v227_v12, %v226_v11 }
  0x49   : > { %v221_v15 = vrot.slane %v220_v13, 2  ;;  %v229_v16 = vrot.slane %v228_v14, 2 }
  0x4b   : > { %v222_v17 = vadd.f32 %v221_v15, %v220_v13  ;;  %v230_v18 = vadd.f32 %v229_v16, %v228_v14 }
  0x4d   : > { %v223_v19 = vrot.slane %v222_v17, 1  ;;  %v231_v20 = vrot.slane %v230_v18, 1 }
  0x4f   : > { %v224_v21 = vadd.f32 %v223_v19, %v222_v17  ;;  %v232_v22 = vadd.f32 %v231_v20, %v230_v18 }
  0x51   : > { %225 = vst [vmem:[%s191_s17] sm:$0x1] %v224_v21  ;;  %233 = vst [vmem:[%s197_s22] sm:$0x1] %v232_v22 }
  0x52   : > { %523 = shalt.err (!%p520_p5)
}
  0x53   : > { %s524_s17 = scalar_lea.hbm %s778_s27, 16  ;;  %s528_s12 = scalar_lea.hbm %s856_s1, 128 }
  0x54   : > { %p525_p6 = scmp.ne.s32.totalorder %s778_s27, %s524_s17  ;;  %p529_p11 = scmp.lt.s32.totalorder %s778_s27, %s856_s1 }
  0x55   : > { %p530_p3 = scmp.lt.s32.totalorder %s528_s12, %s524_s17 }
  0x56   : > { %p526_p7 = pnand %p525_p6, %p722_p9 }
  0x57   : > { %p531_p13 = por %p530_p3, %p529_p11 }
  0x58   : > { %p527_p10 = pneg %p526_p7 }
  0x5a   : > { %p532_p8 = pnand %p531_p13, %p527_p10 }
  0x5c   : > { %535 = shalt.err (!%p532_p8)
}
  0x5d   : > { %400 = dma.vmem_to_hbm [thread:$0]  (%p722_p9), %s771_s18, 16, %s778_s27, %s235_s29  }
  0x5e   : > { %s239_s4 = scalar_lea.sflag [#allocation9], %s759_s23  ;;  %s536_s6 = scalar_lea.vmem %s773_s26, 16 }
  0x5f   : > { %p537_p12 = scmp.ne.s32.totalorder %s773_s26, %s536_s6  ;;  %s641_s8 = smov [#allocation8]  }
  0x60   : > { %s540_s24 = sshll.u32 %s641_s8, 4  ;;  %s541_s24 = int_to_ptr.vmem [resolvable:$false] %s540_s24 }
  0x61   : > { %p538_p0 = pnand %p537_p12, %p722_p9  ;;  %s542_s7 = scalar_lea.vmem %s541_s24, 32 }
  0x62   : > { %p543_p2 = scmp.lt.s32.totalorder %s773_s26, %s541_s24  ;;  %p544_p4 = scmp.lt.s32.totalorder %s542_s7, %s536_s6 }
  0x63   : > { %p539_p1 = pneg %p538_p0 }
  0x64   : > { %p545_p5 = por %p544_p4, %p543_p2 }
  0x66   : > { %p546_p6 = pnand %p545_p5, %p539_p1 }
  0x68   : > { %549 = shalt.err (!%p546_p6)
}
  0x69   : > { %s550_s18 = scalar_lea.hbm %s783_s5, 16  ;;  %s554_s29 = scalar_lea.hbm %s857_s2, 128 }
  0x6a   : > { %p551_p7 = scmp.ne.s32.totalorder %s783_s5, %s550_s18  ;;  %p555_p3 = scmp.lt.s32.totalorder %s783_s5, %s857_s2 }
  0x6b   : > { %p556_p13 = scmp.lt.s32.totalorder %s554_s29, %s550_s18 }
  0x6c   : > { %p552_p10 = pnand %p551_p7, %p722_p9 }
  0x6d   : > { %p557_p8 = por %p556_p13, %p555_p3 }
  0x6e   : > { %p553_p11 = pneg %p552_p10 }
  0x70   : > { %p558_p12 = pnand %p557_p8, %p553_p11 }
  0x72   : > { %561 = shalt.err (!%p558_p12)
}
  0x73   : > { %401 = dma.vmem_to_hbm [thread:$0]  (%p722_p9), %s773_s26, 16, %s783_s5, %s239_s4  }
  0x74 PF: > { %p416_p0 = scmp.ge.s32.totalorder %s636_s16, 2  ;;  %s280_s21 = sand.u32 1, %s608_s9  }
  0x75   : > { %p863_p1 = scmp.ne.s32.totalorder %s861_s28, 0  ;;  %s281_s12 = scalar_lea.sflag [#allocation6], %s280_s21 }
  0x77   : > { %p409_p2 = pnand %p416_p0, %p863_p1 }
  0x79   : > { %p410_p4 = pneg %p409_p2 }
  0x7b   : > { %599 = dma.done.wait (%p410_p4), %s281_s12, 16  }
  0x7c   : > { %601 = vsyncadd (%p410_p4), %s281_s12, 4294967280  ;;  %s289_s13 = scalar_lea.sflag [#allocation9], %s280_s21 }
  0x7d   : > { %603 = dma.done.wait (%p410_p4), %s289_s13, 16  }
  0x7e   : > { %605 = vsyncadd (%p410_p4), %s289_s13, 4294967280  ;;  %s22_s16 = sadd.s32 1, %s636_s16   ;;  %s864_s9 = smov %s612_s10 }
  0x7f   : > { %p19_p5 = scmp.ge.s32.totalorder %s22_s16, 10   ;;  %s865_s10 = smov %s616_s11 }
  0x80   : > { %s866_s11 = smov %s735_s30  ;;  %s867_s12 = smov %s628_s14 }
  0x81   : > { %s868_s13 = smov %s632_s15  ;;  %s869_s14 = smov %s872_s19 }
  0x82   : > { %s870_s15 = smov %s876_s20  ;;  %21 = sbr.rel (!%p19_p5) target bundleno = 9 (0x9), region = 94 }
  0x87   :  { %293 = vsyncpa [#allocation5], 1 }
  0x88   :  { %295 = vsyncpa [#allocation5 + $0x1], 1 }
  0x89   :  { %296 = vsyncpa [#allocation6], 1 }
  0x8a   :  { %298 = vsyncpa [#allocation6 + $0x1], 1 }
  0x8b   :  { %299 = vsyncpa [#allocation9], 1 }
  0x8c   :  { %301 = vsyncpa [#allocation9 + $0x1], 1 }

</bundles_post_ra>
